<compile_context>
chip_gen: v5e
topology: v5e:2x2
jax: 0.10.0
libtpu: 0.0.40
codegen_flags: <defaults>
</compile_context>

<pallas_src>
import functools

import jax
import jax.numpy as jnp
from jax.experimental import pallas as pl
from jax.experimental.pallas import tpu as pltpu


def _cdiv(a, b):
    return (a + b - 1) // b


def _round_up(a, b):
    return _cdiv(a, b) * b


def _meanmax_kernel(x_ref, out_ref, *, inv_gs):
    # x_ref block: (bn, gs, hw_tile); out_ref block: (bn, 2, hw_tile).
    x = x_ref[...]
    # Accumulate the mean in float32 regardless of input dtype (bf16-safe).
    s = jnp.sum(x.astype(jnp.float32), axis=1) * inv_gs
    m = jnp.max(x, axis=1)
    out_ref[:, 0, :] = s.astype(out_ref.dtype)
    out_ref[:, 1, :] = m.astype(out_ref.dtype)


def _vmem_budget_bytes():
    """~Half the per-core VMEM, re-derived per generation (v7x has only 64 MiB
    per TensorCore vs 128 MiB on v5e/v6e), capped at 64 MiB. Conservative
    fallback if the query is unavailable."""
    cap = 64 << 20
    try:
        info = pltpu.get_tpu_info()
        cap = int(getattr(info, "vmem_capacity_bytes", cap)) or cap
    except Exception:
        pass
    return min(64 << 20, cap // 2)


def _pick_tiles(NG, gs, hw, dtype_bytes, target_in, max_block_in):
    """Choose (bn, hw_tile). Prefers hw_tile == hw (contiguous full-row DMAs),
    pushes all blocking into bn (ragged last block via cdiv), and guarantees
    at least 2 grid steps whenever the tensor allows it."""
    # Sublane packing of the 2nd-minor dim: 8 rows for 32-bit, 16 for 16-bit, ...
    pack = 8 * max(1, 4 // dtype_bytes)
    gs_pad = _round_up(gs, pack)

    def in_block_bytes(bn, hw_t):
        return bn * gs_pad * _round_up(hw_t, 128) * dtype_bytes

    # Full spatial row unless even an 8-group slab would blow the block budget.
    hw_tile = hw
    if in_block_bytes(8, hw) > max_block_in and hw > 128:
        hw_tile = (max_block_in // (8 * gs_pad * dtype_bytes)) // 128 * 128
        hw_tile = max(128, min(hw_tile, hw))

    per_group = in_block_bytes(1, hw_tile)
    bn = int(max(1, target_in // per_group))
    bn = min(bn, NG)
    while bn > 1 and bn * per_group > max_block_in:
        bn = max(1, bn // 2)

    # Keep >= 2 grid steps so a 'parallel' axis can feed both v7x TensorCores.
    if bn >= NG and hw_tile >= hw:
        if NG >= 2:
            bn = _cdiv(NG, 2)
        elif hw > 128:
            hw_tile = min(_round_up(_cdiv(hw, 2), 128), hw)

    return bn, hw_tile, gs_pad


def mean_max(x, groups: int = 1):
    """Pallas implementation of MeanMax.forward for NCHW input x."""
    N, C, H, W = x.shape
    assert C % groups == 0
    gs = C // groups
    assert gs > 0
    hw = H * W
    NG = N * groups

    # (N, C, H, W) -> (N*groups, gs, H*W): pure reshape, no copy, no pad.
    xr = x.reshape(NG, gs, hw)
    dtype_bytes = jnp.dtype(x.dtype).itemsize

    budget = _vmem_budget_bytes()
    headroom = 4 << 20
    # Pipelined VMEM need ~= 2*in_block + 4*out_block; out_block <= in_block
    # (output minor dims (2, hw) pad to (8, .), input pads gs up to >= 8), so
    # bound the per-step input block by ~budget/6.
    max_block_in = max(1 << 20, (budget - headroom) // 6)
    target_in = max(1 << 20, max_block_in // 2)

    bn, hw_tile, gs_pad = _pick_tiles(NG, gs, hw, dtype_bytes,
                                      target_in, max_block_in)
    grid = (_cdiv(NG, bn), _cdiv(hw, hw_tile))

    # Actual (sublane/lane-padded) VMEM block footprints.
    hw_tile_pad = _round_up(hw_tile, 128)
    in_blk = bn * gs_pad * hw_tile_pad * dtype_bytes
    out_blk = bn * 8 * hw_tile_pad * dtype_bytes   # (2, hw) minor tile pads to (8, .)
    vmem_limit = int(max(16 << 20, 2 * in_blk + 4 * out_blk + headroom))

    out = pl.pallas_call(
        functools.partial(_meanmax_kernel, inv_gs=float(1.0 / gs)),
        out_shape=jax.ShapeDtypeStruct((NG, 2, hw), x.dtype),
        grid=grid,
        in_specs=[pl.BlockSpec((bn, gs, hw_tile), lambda i, j: (i, 0, j))],
        out_specs=pl.BlockSpec((bn, 2, hw_tile), lambda i, j: (i, 0, j)),
        compiler_params=pltpu.CompilerParams(
            dimension_semantics=("parallel", "parallel"),
            vmem_limit_bytes=vmem_limit),
        cost_estimate=pl.CostEstimate(
            flops=2 * N * C * hw,
            transcendentals=0,
            bytes_accessed=(NG * gs * hw + NG * 2 * hw) * dtype_bytes),
    )(xr)

    # (N*groups, 2, hw) -> (N, 2*groups, H, W): pure reshape, already in the
    # torch.cat([mean_g0, max_g0, mean_g1, max_g1, ...], dim=1) channel order.
    return out.reshape(N, 2 * groups, H, W)


def _mean_max_ref(x, groups: int = 1):
    """Pure-JAX reference mirroring the PyTorch module."""
    N, C, H, W = x.shape
    gs = C // groups
    parts = []
    for g in range(groups):
        sl = x[:, g * gs:(g + 1) * gs]
        parts.append(jnp.mean(sl, axis=1, keepdims=True))
        parts.append(jnp.max(sl, axis=1, keepdims=True))
    return jnp.concatenate(parts, axis=1)


if __name__ == "__main__":
    key = jax.random.PRNGKey(0)

    # Main test: multiple groups, HW a multiple of 128.
    N, C, H, W = 2, 8, 16, 16
    groups = 2
    x = jax.random.normal(key, (N, C, H, W), dtype=jnp.float32)
    out = jax.block_until_ready(mean_max(x, groups=groups))
    ref = _mean_max_ref(x, groups=groups)
    assert out.shape == ref.shape == (N, 2 * groups, H, W)
    assert jnp.allclose(out, ref, atol=1e-5, rtol=1e-5)

    # Second test: HW not a multiple of 128 (unpadded full-row block, full-dim
    # exemption) and ragged bn blocking (NG=3, bn=2).
    x2 = jax.random.normal(jax.random.PRNGKey(1), (1, 6, 6, 6), dtype=jnp.float32)
    out2 = jax.block_until_ready(mean_max(x2, groups=3))
    ref2 = _mean_max_ref(x2, groups=3)
    assert out2.shape == ref2.shape == (1, 6, 6, 6)
    assert jnp.allclose(out2, ref2, atol=1e-5, rtol=1e-5)

    print("KERNEL_OK")
</pallas_src>

<mosaic_0001>
module attributes {stable_mosaic.version = 11 : i64} {
  func.func @_meanmax_kernel(%arg0: i32, %arg1: i32, %arg2: memref<2x4x256xf32, #tpu.memory_space<vmem>>, %arg3: memref<2x2x256xf32, #tpu.memory_space<vmem>>) attributes {dimension_semantics = [#tpu.dimension_semantics<parallel>, #tpu.dimension_semantics<parallel>], iteration_bounds = array<i64: 2, 1>, scalar_prefetch = 0 : i64, scratch_operands = 0 : i64, tpu.core_type = #tpu.core_type<tc>, window_params = [{transform_indices = @transform_0, window_bounds = array<i64: 2, 4, 256>}, {transform_indices = @transform_1, window_bounds = array<i64: 2, 2, 256>}]} {
    %c0 = arith.constant 0 : index
    %c0_0 = arith.constant 0 : index
    %c0_1 = arith.constant 0 : index
    %0 = vector.load %arg2[%c0, %c0_0, %c0_1] : memref<2x4x256xf32, #tpu.memory_space<vmem>>, vector<2x4x256xf32>
    %cst = arith.constant dense<0.000000e+00> : vector<2x256xf32>
    %1 = vector.multi_reduction <add>, %0, %cst [1] : vector<2x4x256xf32> to vector<2x256xf32>
    %cst_2 = arith.constant 2.500000e-01 : f32
    %2 = vector.broadcast %cst_2 : f32 to vector<2x256xf32>
    %3 = arith.mulf %1, %2 : vector<2x256xf32>
    %cst_3 = arith.constant dense<0xFF800000> : vector<2x256xf32>
    %4 = vector.multi_reduction <maximumf>, %0, %cst_3 [1] : vector<2x4x256xf32> to vector<2x256xf32>
    %c0_4 = arith.constant 0 : index
    %c0_5 = arith.constant 0 : index
    %c0_6 = arith.constant 0 : index
    %5 = vector.load %arg3[%c0_4, %c0_5, %c0_6] : memref<2x2x256xf32, #tpu.memory_space<vmem>>, vector<2x1x256xf32>
    %6 = vector.shape_cast %5 : vector<2x1x256xf32> to vector<2x256xf32>
    %7 = vector.shape_cast %3 : vector<2x256xf32> to vector<2x1x256xf32>
    tpu.vector_store %arg3[%c0_4, %c0_5, %c0_6], %7 {strides = array<i32>} : memref<2x2x256xf32, #tpu.memory_space<vmem>>, vector<2x1x256xf32>,
    %c0_7 = arith.constant 0 : index
    %c1 = arith.constant 1 : index
    %c0_8 = arith.constant 0 : index
    %8 = vector.load %arg3[%c0_7, %c1, %c0_8] : memref<2x2x256xf32, #tpu.memory_space<vmem>>, vector<2x1x256xf32>
    %9 = vector.shape_cast %8 : vector<2x1x256xf32> to vector<2x256xf32>
    %10 = vector.shape_cast %4 : vector<2x256xf32> to vector<2x1x256xf32>
    tpu.vector_store %arg3[%c0_7, %c1, %c0_8], %10 {strides = array<i32>} : memref<2x2x256xf32, #tpu.memory_space<vmem>>, vector<2x1x256xf32>,
    return
  }
  func.func @transform_0(%arg0: i32, %arg1: i32) -> (i32, i32, i32) {
    %c0_i32 = arith.constant 0 : i32
    %c0_i32_0 = arith.constant 0 : i32
    return %arg0, %c0_i32, %arg1 : i32, i32, i32
  }
  func.func @transform_1(%arg0: i32, %arg1: i32) -> (i32, i32, i32) {
    %c0_i32 = arith.constant 0 : i32
    %c0_i32_0 = arith.constant 0 : i32
    return %arg0, %c0_i32, %arg1 : i32, i32, i32
  }
}

</mosaic_0001>

<bundles_post_ra>
// kernel: tpu_custom_call.1
= control target key start
LH: loop header
LB: loop body
LE: loop exit
PB: predicated region body
PF: predicated region fallthrough
CT: control target
= control target key end

     0   :  { %6 = vsyncpa [#allocation3], 0  ;;  %s748_s0 = inlined_call_operand.hbm [shape: f32[4,4,256], index: 0, kind: input, shape index: {}]   ;;  %s749_s1 = inlined_call_operand.hbm [shape: f32[4,2,256], index: 1, kind: output, shape index: {}]  }
   0x1   :  { %8 = vsyncpa [#allocation3 + $0x1], 0 }
   0x2   :  { %9 = vsyncpa [#allocation4], 0 }
   0x3   :  { %11 = vsyncpa [#allocation4 + $0x1], 0  ;;  %s603_s6 = smov 0   ;;  %s605_s7 = smov 0  }
   0x4   :  { %s607_s8 = smov 0   ;;  %s609_s9 = smov 0  }
   0x5   :  { %s611_s10 = smov 0   ;;  %s613_s11 = smov 0  }
   0x6 LB: > { %s385_s12 = sadd.s32 4294967295, %s587_s11   ;;  %s386_s13 = sadd.s32 4294967294, %s587_s11   ;;  %s587_s11 = sphi %s613_s11, %s17_s11   ;;  %s583_s10 = sphi %s611_s10, %s760_s10   ;;  %s579_s9 = sphi %s609_s9, %s759_s9   ;;  %s575_s8 = sphi %s607_s8, %s758_s8   ;;  %s571_s7 = sphi %s605_s7, %s757_s7   ;;  %s567_s6 = sphi %s603_s6, %s756_s6  }
   0x7   : > { %s29_s14 = sadd.s32 1, %s583_s10  ;;  %s38_s15 = sadd.s32 1, %s575_s8 }
   0x8   : > { %p31_p0 = scmp.ge.s32.totalorder %s29_s14, 2  ;;  %p45_p1 = scmp.ne.s32.totalorder %s575_s8, %s571_s7 }
   0x9   : > { %p46_p2 = scmp.eq.s32.totalorder %s587_s11, 0  ;;  %p51_p3 = scmp.ne.s32.totalorder %s571_s7, %s567_s6 }
   0xa   : > { %s762_s14 = smov (%p31_p0, %s29_s14), 0  ;;  %p52_p5 = scmp.eq.s32.totalorder %s385_s12, 0 }
   0xb   : > { %p644_p4 = por %p46_p2, %p45_p1  ;;  %s33_s17 = ssub.s32 %s583_s10, %s762_s14 }
   0xc   : > { %p77_p6 = scmp.eq.s32.totalorder %s385_s12, 1  ;;  %p36_p7 = scmp.eq.s32.totalorder %s33_s17, 0 }
   0xd   : > { %p650_p8 = por %p52_p5, %p51_p3  ;;  %p83_p10 = scmp.eq.s32.totalorder %s386_s13, 1 }
   0xe   : > { %p654_p9 = por %p77_p6, %p45_p1  ;;  %p388_p12 = scmp.ge.s32.totalorder %s587_s11, 2 }
   0xf   : > { %s659_s20 = scalar_select %p36_p7, %s575_s8, %s38_s15  }
  0x10   : > { %p661_p11 = por %p83_p10, %p51_p3  ;;  %p421_p13 = scmp.lt.s32.totalorder %s587_s11, 2 }
  0x11   : > { %s103_s22 = sand.u32 1, %s575_s8   ;;  %s406_s24 = sshll.u32 %s583_s10, 4 }
  0x12   : > { %s389_s23 = sshll.u32 %s103_s22, 4  ;;  %s115_s27 = scalar_lea.hbm %s748_s0, %s406_s24 }
  0x13   : > { %s107_s28 = scalar_lea.vmem [#allocation2], %s389_s23  ;;  %s116_s30 = sshll.u32 %s115_s27, 4  ;;  %s117_s30 = int_to_ptr.hbm [resolvable:$true] %s116_s30 }
  0x14   : > { %s118_s29 = sshll.u32 %s107_s28, 4  ;;  %p414_p0 = pnand %p421_p13, %p644_p4  ;;  %s119_s29 = int_to_ptr.vmem [resolvable:$true] %s118_s29 }
  0x15   : > { %p393_p1 = scmp.ge.s32.totalorder %s587_s11, 1  ;;  %s104_s2 = scalar_lea.sflag [#allocation3], %s103_s22 }
  0x16   : > { %s589_s3 = smov 128   ;;  %s590_s4 = smov 8  }
  0x17   : > { %416 = dma.hbm_to_vmem [thread:$0]  (!%p414_p0), %s117_s30, 256, %s119_s29, %s104_s2, %s589_s3, %s589_s3, %s590_s4  }
  0x18   : > { %p126_p2 = scmp.lt.s32.totalorder %s587_s11, 3 }
  0x1a   : > { %p127_p3 = pnand %p393_p1, %p126_p2 }
  0x1b   : > { %s677_s5 = sand.u32 (!%p127_p3), 1, %s571_s7  }
  0x1c   : > { %130 = sbr.rel (%p127_p3) target bundleno = 76 (0x4c), region = 24  ;;  %s394_s12 = sshll.u32 (!%p127_p3), %s677_s5, 4 }
  0x1d   : > { %s133_s13 = scalar_lea.sflag (!%p127_p3), [#allocation3], %s677_s5  ;;  %s136_s15 = scalar_lea.vmem (!%p127_p3), [#allocation2], %s394_s12 }
  0x21   : > { %558 = dma.done.wait (%p650_p8), %s133_s13, 256  }
  0x22   : > { %560 = vsyncadd (%p650_p8), %s133_s13, 4294967040  ;;  %v160_v0 = vld [vmem:[%s136_s15] sm:$0xff]  ;;  %v161_v1 = vld [vmem:[%s136_s15 + $0x8] sm:$0xff]  ;;  %vm175_vm0 = vcmask 1043456   ;;  %v258_v32 = vlaneseq  ;;  %s395_s16 = sshll.u32 %s677_s5, 3  ;;  %vm253_vm1 = vcmask 1040384  }
  0x23   : > { %164 = vst [vmem:[#allocation1] ss:$2 sm:$0xff] %v160_v0  ;;  %s408_s17 = sshll.u32 %s579_s9, 3  ;;  %s155_s18 = scalar_lea.vmem [#allocation5], %s395_s16 }
  0x24   : > { %168 = vst [vmem:[#allocation1 + $0x10] ss:$2 sm:$0xff] %v161_v1  ;;  %vm694_vm2 = vcmp.lt.s32.totalorder %v258_v32, 256  ;;  %s294_s24 = scalar_lea.hbm %s749_s1, %s408_s17  ;;  %s295_s9 = sshll.u32 %s155_s18, 4  ;;  %s296_s9 = int_to_ptr.vmem [resolvable:$true] %s295_s9 }
  0x25   : > { %s297_s25 = sshll.u32 %s294_s24, 4  ;;  %s280_s26 = scalar_lea.sflag [#allocation4], %s677_s5  ;;  %s298_s25 = int_to_ptr.hbm [resolvable:$true] %s297_s25 }
  0x26   : > { %s519_s27 = sshra.s32 %s298_s25, 4  ;;  %s525_s2 = scalar_lea.hbm %s749_s1, 16  ;;  %s520_s27 = int_to_ptr.hbm [resolvable:$true] %s519_s27 }
  0x27   : > { %s521_s28 = scalar_lea.hbm %s520_s27, 8  ;;  %p526_p7 = scmp.lt.s32.totalorder %s520_s27, %s749_s1 }
  0x28   : > { %p522_p4 = scmp.ne.s32.totalorder %s520_s27, %s521_s28  ;;  %p527_p8 = scmp.lt.s32.totalorder %s525_s2, %s521_s28 }
  0x2a   : > { %v165_v2 = vld.sshfl [vmem:[#allocation1] sm:$0xff pattern:$0x75316420]  ;;  %v166_v3 = vld.sshfl [vmem:[#allocation1 + $0x8] sm:$0xff pattern:$0x75316420]  ;;  %p523_p5 = pnand %p522_p4, %p654_p9  ;;  %p528_p10 = por %p527_p8, %p526_p7 }
  0x2b   : > { %v176_v4 = vsel %vm175_vm0, %v165_v2, 0.0  ;;  %v183_v5 = vsel %vm175_vm0, %v166_v3, 0.0  ;;  %208 = vst [vmem:[#allocation1] ss:$2 sm:$0xff] %v160_v0 }
  0x2c   : > { %v177_v6 = vrot.slane %v176_v4, 4  ;;  %v184_v7 = vrot.slane %v183_v5, 4  ;;  %v169_v8 = vld.sshfl [vmem:[#allocation1 + $0x10] sm:$0xff pattern:$0x75316420]  ;;  %p524_p6 = pneg %p523_p5 }
  0x2d   : > { %v170_v9 = vld.sshfl [vmem:[#allocation1 + $0x18] sm:$0xff pattern:$0x75316420]  ;;  %v190_v10 = vsel %vm175_vm0, %v169_v8, 0.0 }
  0x2e   : > { %v178_v11 = vadd.f32 %v177_v6, %v176_v4  ;;  %v185_v12 = vadd.f32 %v184_v7, %v183_v5  ;;  %v191_v13 = vrot.slane %v190_v10, 4  ;;  %v197_v14 = vsel %vm175_vm0, %v170_v9, 0.0  ;;  %212 = vst [vmem:[#allocation1 + $0x10] ss:$2 sm:$0xff] %v161_v1  ;;  %p529_p13 = pnand %p528_p10, %p524_p6 }
  0x2f   : > { %v198_v15 = vrot.slane %v197_v14, 4 }
  0x30   : > { %v179_v16 = vrot.slane %v178_v11, 2  ;;  %v186_v17 = vrot.slane %v185_v12, 2  ;;  %v192_v18 = vadd.f32 %v191_v13, %v190_v10 }
  0x31   : > { %v199_v19 = vadd.f32 %v198_v15, %v197_v14 }
  0x32   : > { %v180_v20 = vadd.f32 %v179_v16, %v178_v11  ;;  %v187_v21 = vadd.f32 %v186_v17, %v185_v12  ;;  %v193_v22 = vrot.slane %v192_v18, 2  ;;  %v209_v23 = vld.sshfl [vmem:[#allocation1] sm:$0xff pattern:$0x75316420] }
  0x33   : > { %v200_v24 = vrot.slane %v199_v19, 2  ;;  %v210_v25 = vld.sshfl [vmem:[#allocation1 + $0x8] sm:$0xff pattern:$0x75316420]  ;;  %v219_v26 = vsel %vm175_vm0, %v209_v23, -inf }
  0x34   : > { %v194_v27 = vadd.f32 %v193_v22, %v192_v18  ;;  %v181_v28 = vrot.slane %v180_v20, 1  ;;  %v188_v29 = vrot.slane %v187_v21, 1  ;;  %v220_v30 = vrot.slane %v219_v26, 4 }
  0x35   : > { %v201_v31 = vadd.f32 %v200_v24, %v199_v19  ;;  %v226_v33 = vsel %vm175_vm0, %v210_v25, -inf  ;;  %v213_v34 = vld.sshfl [vmem:[#allocation1 + $0x10] sm:$0xff pattern:$0x75316420] }
  0x36   : > { %v182_v35 = vadd.f32 %v181_v28, %v180_v20  ;;  %v189_v36 = vadd.f32 %v188_v29, %v187_v21  ;;  %v195_v37 = vrot.slane %v194_v27, 1  ;;  %v221_v38 = vmax.f32 %v219_v26, %v220_v30  ;;  %v214_v39 = vld.sshfl [vmem:[#allocation1 + $0x18] sm:$0xff pattern:$0x75316420] }
  0x37   : > { %v202_v40 = vrot.slane %v201_v31, 1  ;;  %v227_v41 = vrot.slane %v226_v33, 4  ;;  %v233_v42 = vsel %vm175_vm0, %v213_v34, -inf  ;;  %v240_v43 = vsel %vm175_vm0, %v214_v39, -inf }
  0x38   : > { %v205_v44 = vmul.f32 0.25, %v189_v36  ;;  %v196_v45 = vadd.f32 %v195_v37, %v194_v27  ;;  %v222_v46 = vrot.slane %v221_v38, 2  ;;  %v234_v49 = vrot.slane %v233_v42, 4 }
  0x39   : > { %v203_v47 = vadd.f32 %v202_v40, %v201_v31  ;;  %v228_v48 = vmax.f32 %v226_v33, %v227_v41  ;;  %v241_v50 = vrot.slane %v240_v43, 4  ;;  %v204_v51 = vmul.f32 0.25, %v182_v35 }
  0x3a   : > { %v251_v52 = vrot.slane %v205_v44, 7  ;;  %v223_v54 = vmax.f32 %v221_v38, %v222_v46  ;;  %v235_v57 = vmax.f32 %v233_v42, %v234_v49  ;;  %v206_v60 = vmul.f32 0.25, %v196_v45 }
  0x3b   : > { %v207_v55 = vmul.f32 0.25, %v203_v47  ;;  %v229_v56 = vrot.slane %v228_v48, 2  ;;  %v242_v58 = vmax.f32 %v240_v43, %v241_v50 }
  0x3c   : > { %v254_v59 = vsel %vm253_vm1, %v204_v51, %v251_v52  ;;  %v236_v63 = vrot.slane %v235_v57, 2  ;;  %v224_v1 = vrot.slane %v223_v54, 1 }
  0x3d   : > { %262 = vst.msk [vmem:[%s155_s18] ss:$2 sm:$0x3] %vm694_vm2, %v254_v59  ;;  %v252_v61 = vrot.slane %v207_v55, 7  ;;  %v230_v62 = vmax.f32 %v228_v48, %v229_v56  ;;  %v243_v0 = vrot.slane %v242_v58, 2 }
  0x3e   : > { %v237_v4 = vmax.f32 %v235_v57, %v236_v63  ;;  %v225_v9 = vmax.f32 %v223_v54, %v224_v1 }
  0x3f   : > { %v255_v2 = vsel %vm253_vm1, %v206_v60, %v252_v61  ;;  %v231_v3 = vrot.slane %v230_v62, 1  ;;  %v244_v5 = vmax.f32 %v242_v58, %v243_v0 }
  0x40   : > { %396 = vst.msk [vmem:[%s155_s18 + $0x4] ss:$2 sm:$0x3] %vm694_vm2, %v255_v2  ;;  %v238_v7 = vrot.slane %v237_v4, 1 }
  0x41   : > { %v232_v6 = vmax.f32 %v230_v62, %v231_v3  ;;  %v245_v8 = vrot.slane %v244_v5, 1 }
  0x42   : > { %v239_v13 = vmax.f32 %v237_v4, %v238_v7 }
  0x43   : > { %v269_v10 = vrot.slane %v232_v6, 7  ;;  %v246_v11 = vmax.f32 %v244_v5, %v245_v8 }
  0x45   : > { %v271_v12 = vsel %vm253_vm1, %v225_v9, %v269_v10  ;;  %v270_v14 = vrot.slane %v246_v11, 7 }
  0x46   : > { %397 = vst.msk [vmem:[%s155_s18 + $0x1] ss:$2 sm:$0x3] %vm694_vm2, %v271_v12 }
  0x47   : > { %v272_v15 = vsel %vm253_vm1, %v239_v13, %v270_v14 }
  0x48   : > { %398 = vst.msk [vmem:[%s155_s18 + $0x5] ss:$2 sm:$0x3] %vm694_vm2, %v272_v15 }
  0x49   : > { %532 = shalt.err (!%p529_p13)
}
  0x4a   : > { %s591_s5 = smov 64   ;;  %s592_s12 = smov 4  }
  0x4b   : > { %411 = dma.vmem_to_hbm [thread:$0]  (%p654_p9), %s296_s9, 128, %s298_s25, %s280_s26, %s591_s5, %s591_s5, %s592_s12  }
  0x4c PF: > { %s312_s13 = sand.u32 1, %s567_s6   ;;  %p418_p0 = pnand %p388_p12, %p661_p11 }
  0x4d   : > { %s313_s15 = scalar_lea.sflag [#allocation4], %s312_s13 }
  0x4e   : > { %p419_p1 = pneg %p418_p0 }
  0x50   : > { %562 = dma.done.wait (%p419_p1), %s313_s15, 128  }
  0x51   : > { %564 = vsyncadd (%p419_p1), %s313_s15, 4294967168  ;;  %s17_s11 = sadd.s32 1, %s587_s11   ;;  %s756_s6 = smov %s571_s7 }
  0x52   : > { %p14_p2 = scmp.ge.s32.totalorder %s17_s11, 4   ;;  %s757_s7 = smov %s575_s8 }
  0x53   : > { %s758_s8 = smov %s659_s20  ;;  %s759_s9 = smov %s583_s10 }
  0x54   : > { %s760_s10 = smov %s762_s14  ;;  %16 = sbr.rel (!%p14_p2) target bundleno = 6 (0x6), region = 74 }
  0x59   :  { %319 = vsyncpa [#allocation3], 1 }
  0x5a   :  { %321 = vsyncpa [#allocation3 + $0x1], 1 }
  0x5b   :  { %322 = vsyncpa [#allocation4], 1 }
  0x5c   :  { %324 = vsyncpa [#allocation4 + $0x1], 1 }

</bundles_post_ra>
